<compile_context>
chip_gen: v5e
topology: v5e:2x2
jax: 0.10.0
libtpu: 0.0.40
codegen_flags: <defaults>
</compile_context>

<pallas_src>
import functools
import math

import jax
import jax.numpy as jnp
from jax import lax
from jax.experimental import pallas as pl
from jax.experimental.pallas import tpu as pltpu


# ---------------------------------------------------------------------------
# Pallas kernel: one (batch, head-block, query-tile, key-tile) step.
# ---------------------------------------------------------------------------
def _qkv_attention_kernel(q_ref, k_ref, v_ref, o_ref, m_sc, l_sc, acc_sc,
                          *, scale_sq):
    # q_ref: (hb, C, Tq)   k_ref/v_ref: (hb, C, Tk)   o_ref: (hb, C, Tq)
    # m_sc/l_sc: (hb, 1, Tq) f32     acc_sc: (hb, C, Tq) f32
    ki = pl.program_id(3)

    @pl.when(ki == 0)
    def _():
        m_sc[...] = jnp.full_like(m_sc, -jnp.inf)
        l_sc[...] = jnp.zeros_like(l_sc)
        acc_sc[...] = jnp.zeros_like(acc_sc)

    # Fold both scales into q: (q*s)·(k*s) == (q*s*s)·k, so k is untouched.
    q = q_ref[...] * scale_sq                       # (hb, C, Tq), native dtype
    k = k_ref[...]                                  # (hb, C, Tk)
    # s[h, s, t] = sum_c k[h, c, s] * q[h, c, t]  (keys on sublanes, queries
    # on lanes) -> MXU matmul with f32 accumulation.
    s = lax.dot_general(k, q, (((1,), (1,)), ((0,), (0,))),
                        preferred_element_type=jnp.float32)   # (hb, Tk, Tq)

    # Online softmax over the key (sublane) axis, all in f32.
    m_prev = m_sc[...]
    m_new = jnp.maximum(m_prev, jnp.max(s, axis=1, keepdims=True))
    alpha = jnp.exp(m_prev - m_new)                 # (hb, 1, Tq)
    p = jnp.exp(s - m_new)                          # (hb, Tk, Tq), unnormalized
    l_sc[...] = alpha * l_sc[...] + jnp.sum(p, axis=1, keepdims=True)
    m_sc[...] = m_new

    # a[h, c, t] = sum_s v[h, c, s] * p[h, s, t]; weights cast back to the
    # value dtype (like torch's weight.type(weight.dtype)), f32 accumulation.
    v = v_ref[...]
    pv = lax.dot_general(v, p.astype(v.dtype), (((2,), (1,)), ((0,), (0,))),
                         preferred_element_type=jnp.float32)  # (hb, C, Tq)
    acc_sc[...] = alpha * acc_sc[...] + pv

    @pl.when(ki == pl.num_programs(3) - 1)
    def _():
        # Deferred normalization: exact reciprocal on a (hb, 1, Tq) vector
        # only, then one (hb, C, Tq) multiply.
        o_ref[...] = (acc_sc[...] * (1.0 / l_sc[...])).astype(o_ref.dtype)


# ---------------------------------------------------------------------------
# Tile / VMEM sizing
# ---------------------------------------------------------------------------
def _vmem_need_bytes(hb, ch, tq, tk, itemsize):
    io = 2 * hb * ch * (tq + 2 * tk + tq) * itemsize   # q,k,v,o double-buffered
    scores = 4 * hb * tq * tk * 4                      # live f32 score copies
    scratch = (hb * ch * tq + 2 * hb * tq) * 4         # acc, m, l
    return io + scores + scratch


_TILE_BUDGET = 32 * 1024 * 1024   # conservative: fits every chip's VMEM


def _select_tiles(n_heads, ch, T, itemsize):
    # Query tile: 256-aligned when T is split (v6e/v7x MXU), capped at 512 so
    # the f32 score block stays VMEM-friendly on v7x (64 MiB VMEM).
    tq = T
    for cand in (512, 256):
        if T > cand and T % cand == 0:
            tq = cand
            break
    # Key tile: as big as fits the budget (fewer online-softmax passes);
    # falls back to flash-style key tiling for long T.
    tk = T
    if _vmem_need_bytes(1, ch, tq, tk, itemsize) > _TILE_BUDGET:
        for cand in (1024, 512, 256, 128):
            if (T > cand and T % cand == 0 and
                    _vmem_need_bytes(1, ch, tq, cand, itemsize) <= _TILE_BUDGET):
                tk = cand
                break
    # Head block: amortize per-grid-step overhead / tiny DMAs when per-head
    # work is small (small C, T), bounded by the same VMEM budget.
    hb = 1
    for cand in (8, 4, 2):
        if (n_heads % cand == 0 and
                _vmem_need_bytes(cand, ch, tq, tk, itemsize) <= _TILE_BUDGET):
            hb = cand
            break
    return hb, tq, tk


def _vmem_limit_bytes():
    # Leave headroom for Mosaic internal scratch; v7x has only 64 MiB/TC.
    cap = 64 * 1024 * 1024
    try:
        cap = getattr(pltpu.get_tpu_info(), "vmem_capacity_bytes", cap)
    except Exception:
        pass
    return min(int(cap * 3 // 4), 96 * 1024 * 1024)


# ---------------------------------------------------------------------------
# Wrapper
# ---------------------------------------------------------------------------
def qkv_attention(qkv, n_heads):
    """Forward of QKVAttention: qkv [N, 3*H*C, T] -> [N, H*C, T]."""
    N, width, T = qkv.shape
    assert width % (3 * n_heads) == 0
    ch = width // (3 * n_heads)
    scale_sq = 1.0 / math.sqrt(ch)          # (ch**-0.25)**2, applied to q only

    # Free reshape (contiguous): width axis = (qkv-chunk, head, channel).
    qkv_r = qkv.reshape(N, 3, n_heads, ch, T)
    hb, tq, tk = _select_tiles(n_heads, ch, T, qkv.dtype.itemsize)

    kernel = functools.partial(_qkv_attention_kernel, scale_sq=scale_sq)

    q_spec = pl.BlockSpec((None, None, hb, ch, tq),
                          lambda n, h, qi, ki: (n, 0, h, 0, qi))
    k_spec = pl.BlockSpec((None, None, hb, ch, tk),
                          lambda n, h, qi, ki: (n, 1, h, 0, ki))
    v_spec = pl.BlockSpec((None, None, hb, ch, tk),
                          lambda n, h, qi, ki: (n, 2, h, 0, ki))
    o_spec = pl.BlockSpec((None, hb, ch, tq),
                          lambda n, h, qi, ki: (n, h, 0, qi))

    out = pl.pallas_call(
        kernel,
        out_shape=jax.ShapeDtypeStruct((N, n_heads, ch, T), qkv.dtype),
        grid_spec=pltpu.PrefetchScalarGridSpec(
            num_scalar_prefetch=0,
            grid=(N, n_heads // hb, T // tq, T // tk),
            in_specs=[q_spec, k_spec, v_spec],
            out_specs=o_spec,
            scratch_shapes=[pltpu.VMEM((hb, 1, tq), jnp.float32),   # m
                            pltpu.VMEM((hb, 1, tq), jnp.float32),   # l
                            pltpu.VMEM((hb, ch, tq), jnp.float32)], # acc
        ),
        compiler_params=pltpu.CompilerParams(
            # Megacore shards batch / head-block; query- and key-tile axes
            # iterate sequentially (key axis carries the online-softmax state).
            dimension_semantics=("parallel", "parallel", "arbitrary",
                                 "arbitrary"),
            vmem_limit_bytes=_vmem_limit_bytes(),
        ),
    )(qkv_r, qkv_r, qkv_r)

    return out.reshape(N, n_heads * ch, T)


# ---------------------------------------------------------------------------
# Main
# ---------------------------------------------------------------------------
if __name__ == "__main__":
    N, H, C, T = 2, 2, 16, 128          # qkv width = 3*H*C = 96
    key = jax.random.PRNGKey(0)
    qkv = jax.random.normal(key, (N, 3 * H * C, T), dtype=jnp.float32)

    out = jax.block_until_ready(qkv_attention(qkv, n_heads=H))

    # Pure-JAX reference mirroring the PyTorch forward exactly.
    ch = (3 * H * C) // (3 * H)
    scale = 1.0 / math.sqrt(math.sqrt(ch))
    q, k, v = jnp.split(qkv, 3, axis=1)
    qh = (q * scale).reshape(N * H, ch, T)
    kh = (k * scale).reshape(N * H, ch, T)
    vh = v.reshape(N * H, ch, T)
    w = jnp.einsum("bct,bcs->bts", qh, kh,
                   precision=jax.lax.Precision.HIGHEST)
    w = jax.nn.softmax(w.astype(jnp.float32), axis=-1)
    ref = jnp.einsum("bts,bcs->bct", w, vh,
                     precision=jax.lax.Precision.HIGHEST).reshape(N, H * C, T)

    assert out.shape == (N, H * C, T)
    assert jnp.allclose(out, ref, atol=2e-3, rtol=2e-3)
    print("KERNEL_OK")
</pallas_src>

<mosaic_0001>
module attributes {stable_mosaic.version = 11 : i64} {
  func.func @_qkv_attention_kernel(%arg0: i32, %arg1: i32, %arg2: i32, %arg3: i32, %arg4: memref<1x1x2x16x128xf32, #tpu.memory_space<vmem>>, %arg5: memref<1x1x2x16x128xf32, #tpu.memory_space<vmem>>, %arg6: memref<1x1x2x16x128xf32, #tpu.memory_space<vmem>>, %arg7: memref<1x2x16x128xf32, #tpu.memory_space<vmem>>, %arg8: memref<2x1x128xf32, #tpu.memory_space<vmem>>, %arg9: memref<2x1x128xf32, #tpu.memory_space<vmem>>, %arg10: memref<2x16x128xf32, #tpu.memory_space<vmem>>) attributes {dimension_semantics = [#tpu.dimension_semantics<parallel>, #tpu.dimension_semantics<parallel>, #tpu.dimension_semantics<arbitrary>, #tpu.dimension_semantics<arbitrary>], iteration_bounds = array<i64: 2, 1, 1, 1>, scalar_prefetch = 0 : i64, scratch_operands = 3 : i64, tpu.core_type = #tpu.core_type<tc>, window_params = [{transform_indices = @transform_0, window_bounds = array<i64: 1, 1, 2, 16, 128>}, {transform_indices = @transform_1, window_bounds = array<i64: 1, 1, 2, 16, 128>}, {transform_indices = @transform_2, window_bounds = array<i64: 1, 1, 2, 16, 128>}, {transform_indices = @transform_3, window_bounds = array<i64: 1, 2, 16, 128>}]} {
    %c0_i32 = arith.constant 0 : i32
    %0 = arith.cmpi eq, %arg3, %c0_i32 : i32
    %1 = arith.extui %0 : i1 to i32
    %c0_i32_0 = arith.constant 0 : i32
    %2 = arith.cmpi ne, %1, %c0_i32_0 : i32
    scf.if %2 {
      %cst_39 = arith.constant 0xFF800000 : f32
      %37 = vector.broadcast %cst_39 : f32 to vector<2x1x128xf32>
      %c0_40 = arith.constant 0 : index
      %c0_41 = arith.constant 0 : index
      %c0_42 = arith.constant 0 : index
      %38 = vector.load %arg8[%c0_40, %c0_41, %c0_42] : memref<2x1x128xf32, #tpu.memory_space<vmem>>, vector<2x1x128xf32>
      tpu.vector_store %arg8[%c0_40, %c0_41, %c0_42], %37 {strides = array<i32>} : memref<2x1x128xf32, #tpu.memory_space<vmem>>, vector<2x1x128xf32>,
      %cst_43 = arith.constant 0.000000e+00 : f32
      %39 = vector.broadcast %cst_43 : f32 to vector<2x1x128xf32>
      %c0_44 = arith.constant 0 : index
      %c0_45 = arith.constant 0 : index
      %c0_46 = arith.constant 0 : index
      %40 = vector.load %arg9[%c0_44, %c0_45, %c0_46] : memref<2x1x128xf32, #tpu.memory_space<vmem>>, vector<2x1x128xf32>
      tpu.vector_store %arg9[%c0_44, %c0_45, %c0_46], %39 {strides = array<i32>} : memref<2x1x128xf32, #tpu.memory_space<vmem>>, vector<2x1x128xf32>,
      %cst_47 = arith.constant 0.000000e+00 : f32
      %41 = vector.broadcast %cst_47 : f32 to vector<2x16x128xf32>
      %c0_48 = arith.constant 0 : index
      %c0_49 = arith.constant 0 : index
      %c0_50 = arith.constant 0 : index
      %42 = vector.load %arg10[%c0_48, %c0_49, %c0_50] : memref<2x16x128xf32, #tpu.memory_space<vmem>>, vector<2x16x128xf32>
      tpu.vector_store %arg10[%c0_48, %c0_49, %c0_50], %41 {strides = array<i32>} : memref<2x16x128xf32, #tpu.memory_space<vmem>>, vector<2x16x128xf32>,
    } else {
    }
    %c0 = arith.constant 0 : index
    %c0_1 = arith.constant 0 : index
    %c0_2 = arith.constant 0 : index
    %c0_3 = arith.constant 0 : index
    %c0_4 = arith.constant 0 : index
    %3 = vector.load %arg4[%c0, %c0_1, %c0_2, %c0_3, %c0_4] : memref<1x1x2x16x128xf32, #tpu.memory_space<vmem>>, vector<1x1x2x16x128xf32>
    %4 = vector.shape_cast %3 : vector<1x1x2x16x128xf32> to vector<2x16x128xf32>
    %cst = arith.constant 2.500000e-01 : f32
    %5 = vector.broadcast %cst : f32 to vector<2x16x128xf32>
    %6 = arith.mulf %4, %5 : vector<2x16x128xf32>
    %c0_5 = arith.constant 0 : index
    %c0_6 = arith.constant 0 : index
    %c0_7 = arith.constant 0 : index
    %c0_8 = arith.constant 0 : index
    %c0_9 = arith.constant 0 : index
    %7 = vector.load %arg5[%c0_5, %c0_6, %c0_7, %c0_8, %c0_9] : memref<1x1x2x16x128xf32, #tpu.memory_space<vmem>>, vector<1x1x2x16x128xf32>
    %8 = vector.shape_cast %7 : vector<1x1x2x16x128xf32> to vector<2x16x128xf32>
    %cst_10 = arith.constant dense<0.000000e+00> : vector<2x128x128xf32>
    %9 = tpu.matmul %8, %6, %cst_10 {dimension_numbers = #tpu.dot_dimension_numbers<[1], [1], [2], [2], [0, 0, 0, 2, 1, 2], [0], [0]>} : vector<2x16x128xf32>, vector<2x16x128xf32>, vector<2x128x128xf32> -> vector<2x128x128xf32>
    %c0_11 = arith.constant 0 : index
    %c0_12 = arith.constant 0 : index
    %c0_13 = arith.constant 0 : index
    %10 = vector.load %arg8[%c0_11, %c0_12, %c0_13] : memref<2x1x128xf32, #tpu.memory_space<vmem>>, vector<2x1x128xf32>
    %cst_14 = arith.constant dense<0xFF800000> : vector<2x128xf32>
    %11 = vector.multi_reduction <maximumf>, %9, %cst_14 [1] : vector<2x128x128xf32> to vector<2x128xf32>
    %12 = vector.shape_cast %11 : vector<2x128xf32> to vector<2x1x128xf32>
    %13 = arith.maximumf %10, %12 : vector<2x1x128xf32>
    %14 = arith.subf %10, %13 : vector<2x1x128xf32>
    %15 = math.exp %14 : vector<2x1x128xf32>
    %16 = vector.broadcast %13 : vector<2x1x128xf32> to vector<2x128x128xf32>
    %17 = arith.subf %9, %16 : vector<2x128x128xf32>
    %18 = math.exp %17 : vector<2x128x128xf32>
    %c0_15 = arith.constant 0 : index
    %c0_16 = arith.constant 0 : index
    %c0_17 = arith.constant 0 : index
    %19 = vector.load %arg9[%c0_15, %c0_16, %c0_17] : memref<2x1x128xf32, #tpu.memory_space<vmem>>, vector<2x1x128xf32>
    %20 = arith.mulf %15, %19 : vector<2x1x128xf32>
    %cst_18 = arith.constant dense<0.000000e+00> : vector<2x128xf32>
    %21 = vector.multi_reduction <add>, %18, %cst_18 [1] : vector<2x128x128xf32> to vector<2x128xf32>
    %22 = vector.shape_cast %21 : vector<2x128xf32> to vector<2x1x128xf32>
    %23 = arith.addf %20, %22 : vector<2x1x128xf32>
    %c0_19 = arith.constant 0 : index
    %c0_20 = arith.constant 0 : index
    %c0_21 = arith.constant 0 : index
    %24 = vector.load %arg9[%c0_19, %c0_20, %c0_21] : memref<2x1x128xf32, #tpu.memory_space<vmem>>, vector<2x1x128xf32>
    tpu.vector_store %arg9[%c0_19, %c0_20, %c0_21], %23 {strides = array<i32>} : memref<2x1x128xf32, #tpu.memory_space<vmem>>, vector<2x1x128xf32>,
    %c0_22 = arith.constant 0 : index
    %c0_23 = arith.constant 0 : index
    %c0_24 = arith.constant 0 : index
    %25 = vector.load %arg8[%c0_22, %c0_23, %c0_24] : memref<2x1x128xf32, #tpu.memory_space<vmem>>, vector<2x1x128xf32>
    tpu.vector_store %arg8[%c0_22, %c0_23, %c0_24], %13 {strides = array<i32>} : memref<2x1x128xf32, #tpu.memory_space<vmem>>, vector<2x1x128xf32>,
    %c0_25 = arith.constant 0 : index
    %c0_26 = arith.constant 0 : index
    %c0_27 = arith.constant 0 : index
    %c0_28 = arith.constant 0 : index
    %c0_29 = arith.constant 0 : index
    %26 = vector.load %arg6[%c0_25, %c0_26, %c0_27, %c0_28, %c0_29] : memref<1x1x2x16x128xf32, #tpu.memory_space<vmem>>, vector<1x1x2x16x128xf32>
    %27 = vector.shape_cast %26 : vector<1x1x2x16x128xf32> to vector<2x16x128xf32>
    %cst_30 = arith.constant dense<0.000000e+00> : vector<2x16x128xf32>
    %28 = tpu.matmul %27, %18, %cst_30 {dimension_numbers = #tpu.dot_dimension_numbers<[2], [1], [1], [2], [0, 0, 0, 1, 1, 2], [0], [0]>} : vector<2x16x128xf32>, vector<2x128x128xf32>, vector<2x16x128xf32> -> vector<2x16x128xf32>
    %c0_31 = arith.constant 0 : index
    %c0_32 = arith.constant 0 : index
    %c0_33 = arith.constant 0 : index
    %29 = vector.load %arg10[%c0_31, %c0_32, %c0_33] : memref<2x16x128xf32, #tpu.memory_space<vmem>>, vector<2x16x128xf32>
    %30 = vector.broadcast %15 : vector<2x1x128xf32> to vector<2x16x128xf32>
    %31 = arith.mulf %30, %29 : vector<2x16x128xf32>
    %32 = arith.addf %31, %28 : vector<2x16x128xf32>
    %c0_34 = arith.constant 0 : index
    %c0_35 = arith.constant 0 : index
    %c0_36 = arith.constant 0 : index
    %33 = vector.load %arg10[%c0_34, %c0_35, %c0_36] : memref<2x16x128xf32, #tpu.memory_space<vmem>>, vector<2x16x128xf32>
    tpu.vector_store %arg10[%c0_34, %c0_35, %c0_36], %32 {strides = array<i32>} : memref<2x16x128xf32, #tpu.memory_space<vmem>>, vector<2x16x128xf32>,
    %c0_i32_37 = arith.constant 0 : i32
    %34 = arith.cmpi eq, %arg3, %c0_i32_37 : i32
    %35 = arith.extui %34 : i1 to i32
    %c0_i32_38 = arith.constant 0 : i32
    %36 = arith.cmpi ne, %35, %c0_i32_38 : i32
    scf.if %36 {
      %c0_39 = arith.constant 0 : index
      %c0_40 = arith.constant 0 : index
      %c0_41 = arith.constant 0 : index
      %37 = vector.load %arg10[%c0_39, %c0_40, %c0_41] : memref<2x16x128xf32, #tpu.memory_space<vmem>>, vector<2x16x128xf32>
      %c0_42 = arith.constant 0 : index
      %c0_43 = arith.constant 0 : index
      %c0_44 = arith.constant 0 : index
      %38 = vector.load %arg9[%c0_42, %c0_43, %c0_44] : memref<2x1x128xf32, #tpu.memory_space<vmem>>, vector<2x1x128xf32>
      %cst_45 = arith.constant 1.000000e+00 : f32
      %39 = vector.broadcast %cst_45 : f32 to vector<2x1x128xf32>
      %40 = arith.divf %39, %38 : vector<2x1x128xf32>
      %41 = vector.broadcast %40 : vector<2x1x128xf32> to vector<2x16x128xf32>
      %42 = arith.mulf %37, %41 : vector<2x16x128xf32>
      %c0_46 = arith.constant 0 : index
      %c0_47 = arith.constant 0 : index
      %c0_48 = arith.constant 0 : index
      %c0_49 = arith.constant 0 : index
      %43 = vector.load %arg7[%c0_46, %c0_47, %c0_48, %c0_49] : memref<1x2x16x128xf32, #tpu.memory_space<vmem>>, vector<1x2x16x128xf32>
      %44 = vector.shape_cast %43 : vector<1x2x16x128xf32> to vector<2x16x128xf32>
      %45 = vector.shape_cast %42 : vector<2x16x128xf32> to vector<1x2x16x128xf32>
      tpu.vector_store %arg7[%c0_46, %c0_47, %c0_48, %c0_49], %45 {strides = array<i32>} : memref<1x2x16x128xf32, #tpu.memory_space<vmem>>, vector<1x2x16x128xf32>,
    } else {
    }
    return
  }
  func.func @transform_0(%arg0: i32, %arg1: i32, %arg2: i32, %arg3: i32) -> (i32, i32, i32, i32, i32) {
    %c0_i32 = arith.constant 0 : i32
    %c0_i32_0 = arith.constant 0 : i32
    %c0_i32_1 = arith.constant 0 : i32
    return %arg0, %c0_i32, %arg1, %c0_i32_0, %arg2 : i32, i32, i32, i32, i32
  }
  func.func @transform_1(%arg0: i32, %arg1: i32, %arg2: i32, %arg3: i32) -> (i32, i32, i32, i32, i32) {
    %c1_i32 = arith.constant 1 : i32
    %c0_i32 = arith.constant 0 : i32
    %c0_i32_0 = arith.constant 0 : i32
    return %arg0, %c1_i32, %arg1, %c0_i32, %arg3 : i32, i32, i32, i32, i32
  }
  func.func @transform_2(%arg0: i32, %arg1: i32, %arg2: i32, %arg3: i32) -> (i32, i32, i32, i32, i32) {
    %c2_i32 = arith.constant 2 : i32
    %c0_i32 = arith.constant 0 : i32
    %c0_i32_0 = arith.constant 0 : i32
    return %arg0, %c2_i32, %arg1, %c0_i32, %arg3 : i32, i32, i32, i32, i32
  }
  func.func @transform_3(%arg0: i32, %arg1: i32, %arg2: i32, %arg3: i32) -> (i32, i32, i32, i32) {
    %c0_i32 = arith.constant 0 : i32
    %c0_i32_0 = arith.constant 0 : i32
    return %arg0, %arg1, %c0_i32, %arg2 : i32, i32, i32, i32
  }
}

</mosaic_0001>

<bundles_post_ra>
// kernel: tpu_custom_call.1
= control target key start
LH: loop header
LB: loop body
LE: loop exit
PB: predicated region body
PF: predicated region fallthrough
CT: control target
= control target key end

     0   :  { %s2002_s0 = inlined_call_operand.hbm [shape: f32[2,3,2,16,128], index: 0, kind: input, shape index: {}]   ;;  %s2003_s1 = inlined_call_operand.hbm [shape: f32[2,3,2,16,128], index: 1, kind: input, shape index: {}]   ;;  %s2004_s2 = inlined_call_operand.hbm [shape: f32[2,3,2,16,128], index: 2, kind: input, shape index: {}]   ;;  %s2005_s3 = inlined_call_operand.hbm [shape: f32[2,2,16,128], index: 3, kind: output, shape index: {}]  }
   0x1   :  { %2012 = sst [smem:[#allocation21_spill]] %s2003_s1 }
   0x2   :  { %8 = vsyncpa [#allocation6], 0 }
   0x3   :  { %10 = vsyncpa [#allocation6 + $0x1], 0 }
   0x4   :  { %11 = vsyncpa [#allocation9], 0 }
   0x5   :  { %13 = vsyncpa [#allocation9 + $0x1], 0 }
   0x6   :  { %14 = vsyncpa [#allocation7], 0 }
   0x7   :  { %16 = vsyncpa [#allocation7 + $0x1], 0  ;;  %s1558_s12 = smov 0   ;;  %s1560_s13 = smov 0  }
   0x8   :  { %s1562_s14 = smov 0   ;;  %s1564_s15 = smov 0  }
   0x9   :  { %s1566_s16 = smov 0   ;;  %s1568_s17 = smov 0  }
   0xa LB: > { %2013 = sst [smem:[#allocation15_spill]] %s1518_s14  ;;  %s1589_s18 = sadd.s32 4294967295, %s1530_s17   ;;  %s1530_s17 = sphi %s1568_s17, %s22_s17   ;;  %s1526_s16 = sphi %s1566_s16, %s2031_s16   ;;  %s1522_s15 = sphi %s1564_s15, %s2030_s15   ;;  %s1518_s14 = sphi %s1562_s14, %s2034_s14   ;;  %s1514_s13 = sphi %s1560_s13, %s2033_s13   ;;  %s1510_s12 = sphi %s1558_s12, %s2032_s12  }
   0xb   : > { %2014 = sst [smem:[#allocation16_spill]] %s1526_s16  ;;  %s1147_s19 = sadd.s32 4294967294, %s1530_s17  }
   0xc   : > { %2015 = sst [smem:[#allocation17_spill]] %s1530_s17  ;;  %s48_s20 = sadd.s32 1, %s1526_s16 }
   0xd   : > { %s59_s21 = sadd.s32 1, %s1518_s14  ;;  %p50_p0 = scmp.ge.s32.totalorder %s48_s20, 2 }
   0xe   : > { %p66_p1 = scmp.ne.s32.totalorder %s1518_s14, %s1514_s13  ;;  %p67_p2 = scmp.eq.s32.totalorder %s1530_s17, 0 }
   0xf   : > { %p72_p3 = scmp.ne.s32.totalorder %s1514_s13, %s1510_s12  ;;  %s2036_s20 = smov (%p50_p0, %s48_s20), 0 }
  0x10   : > { %2016 = sst [smem:[#allocation18_spill]] %s2036_s20  ;;  %p1601_p4 = por %p67_p2, %p66_p1 }
  0x11   : > { %p73_p5 = scmp.eq.s32.totalorder %s1589_s18, 0  ;;  %s52_s23 = ssub.s32 %s1526_s16, %s2036_s20 }
  0x12   : > { %p160_p6 = scmp.eq.s32.totalorder %s1589_s18, 1  ;;  %p57_p7 = scmp.eq.s32.totalorder %s52_s23, 0 }
  0x13   : > { %p1609_p8 = por %p73_p5, %p72_p3  ;;  %p166_p10 = scmp.eq.s32.totalorder %s1147_s19, 1 }
  0x14   : > { %p1613_p9 = por %p160_p6, %p66_p1  ;;  %p1149_p12 = scmp.ge.s32.totalorder %s1530_s17, 2 }
  0x15   : > { %s1618_s26 = scalar_select %p57_p7, %s1518_s14, %s59_s21  }
  0x16   : > { %p1620_p11 = por %p166_p10, %p72_p3  ;;  %p1226_p13 = scmp.lt.s32.totalorder %s1530_s17, 2 }
  0x17   : > { %2020 = sst [smem:[#allocation19_spill]] %s1618_s26  ;;  %s186_s28 = sand.u32 1, %s1518_s14  }
  0x18   : > { %s2021_s27 = scalar_select %p1620_p11, 1, 0 }
  0x19   : > { %s1627_s29 = sshll.u32 %s186_s28, 5  ;;  %s1630_s30 = smul.u32 96, %s1526_s16 }
  0x1a   : > { %2022 = sst [smem:[#allocation20_spill]] %s2021_s27  ;;  %p1634_p0 = pnand %p1226_p13, %p1601_p4 }
  0x1b   : > { %s212_s5 = sand.u32 1, %s1530_s17   ;;  %s2024_s1 = sld [smem:[#allocation21_spill]] }
  0x1c   : > { %s216_s10 = scalar_lea.vmem [#allocation8], %s1627_s29  ;;  %p1156_p1 = scmp.ge.s32.totalorder %s1530_s17, 1 }
  0x1d   : > { %s229_s11 = sshll.u32 %s216_s10, 4  ;;  %s213_s21 = scalar_lea.sflag [#allocation9], %s212_s5  ;;  %s230_s11 = int_to_ptr.vmem [resolvable:$true] %s229_s11 }
  0x1e   : > { %s1532_s22 = smov 128   ;;  %s1533_s23 = smov 8  }
  0x1f   : > { %p264_p2 = scmp.lt.s32.totalorder %s1530_s17, 3  ;;  %s190_s10 = scalar_lea.vmem [#allocation5], %s1627_s29 }
  0x20   : > { %s187_s5 = scalar_lea.sflag [#allocation6], %s186_s28  ;;  %s243_s26 = scalar_lea.vmem [#allocation10], %s1627_s29 }
  0x21   : > { %s1045_s8 = scalar_lea.hbm %s2024_s1, %s1630_s30  ;;  %p1648_p3 = pnand %p1156_p1, %p264_p2 }
  0x22   : > { %s1046_s9 = scalar_lea.hbm %s1045_s8, 32  ;;  %s202_s1 = sshll.u32 %s190_s10, 4  ;;  %s203_s1 = int_to_ptr.vmem [resolvable:$true] %s202_s1 }
  0x23   : > { %s227_s19 = sshll.u32 %s1046_s9, 4  ;;  %s199_s9 = scalar_lea.hbm %s2002_s0, %s1630_s30  ;;  %s228_s19 = int_to_ptr.hbm [resolvable:$true] %s227_s19 }
  0x24   : > { %1218 = dma.hbm_to_vmem [thread:$0]  (!%p1634_p0), %s228_s19, 512, %s230_s11, %s213_s21, %s1532_s22, %s1532_s22, %s1533_s23  }
  0x25   : > { %s200_s20 = sshll.u32 %s199_s9, 4  ;;  %s1055_s19 = scalar_lea.hbm %s2004_s2, %s1630_s30  ;;  %s201_s20 = int_to_ptr.hbm [resolvable:$true] %s200_s20 }
  0x26   : > { %1215 = dma.hbm_to_vmem [thread:$0]  (!%p1634_p0), %s201_s20, 512, %s203_s1, %s187_s5, %s1532_s22, %s1532_s22, %s1533_s23  }
  0x27   : > { %s256_s14 = sshll.u32 %s243_s26, 4  ;;  %s1056_s17 = scalar_lea.hbm %s1055_s19, 64  ;;  %s257_s14 = int_to_ptr.vmem [resolvable:$true] %s256_s14 }
  0x28   : > { %s254_s27 = sshll.u32 %s1056_s17, 4  ;;  %268 = sbr.rel (%p1648_p3) target bundleno = 684 (0x2ac), region = 32  ;;  %s255_s27 = int_to_ptr.hbm [resolvable:$true] %s254_s27 }
  0x29   : > { %1221 = dma.hbm_to_vmem [thread:$0]  (!%p1634_p0), %s255_s27, 512, %s257_s14, %s213_s21, %s1532_s22, %s1532_s22, %s1533_s23  }
  0x2a   : > { %s1669_s28 = sand.u32 (!%p1648_p3), 1, %s1514_s13  }
  0x2b   : > { %s1672_s1 = sshll.u32 (!%p1648_p3), %s1669_s28, 5  ;;  %s271_s16 = scalar_lea.sflag (!%p1648_p3), [#allocation6], %s1669_s28 }
  0x2c   : > { %s274_s20 = scalar_lea.vmem (!%p1648_p3), [#allocation5], %s1672_s1 }
  0x2d   : > { %1497 = dma.done.wait (%p1609_p8), %s271_s16, 512  }
  0x2e   : > { %1499 = vsyncadd (%p1609_p8), %s271_s16, 4294966784  ;;  %s280_s14 = sand.u32 1, %s1589_s18   ;;  %s284_s26 = scalar_lea.vmem [#allocation8], %s1672_s1 }
  0x2f   : > { %s281_s17 = scalar_lea.sflag [#allocation9], %s280_s14 }
  0x30   : > { %1501 = dma.done.wait (%p1609_p8), %s281_s17, 1024  }
  0x31   : > { %1503 = vsyncadd (%p1609_p8), %s281_s17, 4294966272  ;;  %v354_v0 = vld [vmem:[%s284_s26 + $0x10] sm:$0xff]  ;;  %v352_v1 = vld [vmem:[%s284_s26] sm:$0xff]  ;;  %vm388_vm0 = vcmask 130048   ;;  %v1534_v60 = vmov -inf   ;;  %s294_s18 = scalar_lea.vmem [#allocation10], %s1672_s1 }
  0x32   : > { %502 = vxpose.xlu0.b32.start [1/2] (short) %v354_v0, 128  ;;  %356 = vxpose.xlu1.b32.start [1/2] (short) %v352_v1, 128  ;;  %v345_v2 = vld [vmem:[%s274_s20 + $0x8] sm:$0xff]  ;;  %v347_v3 = vld [vmem:[%s274_s20 + $0x18] sm:$0xff]  ;;  %v344_v8 = vld [vmem:[%s274_s20] sm:$0xff]  ;;  %336 = vst [vmem:[#allocation2] sm:$0x1] %v1534_v60  ;;  %s327_s24 = scalar_lea.vmem [#allocation11], %s1672_s1 }
  0x33   : > { %v349_v4 = vmul.f32 0.25, %v345_v2  ;;  %v351_v5 = vmul.f32 0.25, %v347_v3  ;;  %v355_v6 = vld [vmem:[%s284_s26 + $0x18] sm:$0xff]  ;;  %v353_v7 = vld [vmem:[%s284_s26 + $0x8] sm:$0xff]  ;;  %v346_v9 = vld [vmem:[%s274_s20 + $0x10] sm:$0xff]  ;;  %v348_v10 = vmul.f32 0.25, %v344_v8 }
  0x34   : > { %v350_v11 = vmul.f32 0.25, %v346_v9  ;;  %337 = vst [vmem:[#allocation2 + $0x1] sm:$0x1] %v1534_v60  ;;  %s1198_s27 = sshll.u32 %s1522_s15, 5  ;;  %s995_s21 = sshll.u32 %s327_s24, 4  ;;  %s996_s21 = int_to_ptr.vmem [resolvable:$true] %s995_s21 }
  0x35   : > { %451 = vmatpush.msra.mxu0 %v349_v4  ;;  %596 = vmatpush.msra.mxu1 %v351_v5  ;;  %s994_s4 = scalar_lea.hbm %s2005_s3, %s1198_s27  ;;  %s979_s15 = scalar_lea.sflag [#allocation7], %s1669_s28 }
  0x36   : > { %1201 = vmatpush.msra.mxu3 %v351_v5  ;;  %1199 = vmatpush.msra.mxu2 %v349_v4  ;;  %s997_s22 = sshll.u32 %s994_s4, 4  ;;  %s1464_s9 = scalar_lea.hbm %s2005_s3, 64  ;;  %s998_s22 = int_to_ptr.hbm [resolvable:$true] %s997_s22 }
  0x37   : > { %452 = vmatpush.msra.mxu0 %v348_v10  ;;  %597 = vmatpush.msra.mxu1 %v350_v11  ;;  %s1458_s23 = sshra.s32 %s998_s22, 4  ;;  %s1459_s23 = int_to_ptr.hbm [resolvable:$true] %s1458_s23 }
  0x38   : > { %1202 = vmatpush.msra.mxu3 %v350_v11  ;;  %1200 = vmatpush.msra.mxu2 %v348_v10  ;;  %s1460_s6 = scalar_lea.hbm %s1459_s23, 32  ;;  %p1465_p7 = scmp.lt.s32.totalorder %s1459_s23, %s2005_s3 }
  0x39   : > { %p1461_p4 = scmp.ne.s32.totalorder %s1459_s23, %s1460_s6  ;;  %p1466_p8 = scmp.lt.s32.totalorder %s1464_s9, %s1460_s6 }
  0x3a   : > { %503 = vxpose.xlu0.b32.end [2/2] (short) %v355_v6, 128  ;;  %357 = vxpose.xlu1.b32.end [2/2] (short) %v353_v7, 128 }
  0x3b   : > { %p1462_p5 = pnand %p1461_p4, %p1613_p9  ;;  %p1467_p10 = por %p1466_p8, %p1465_p7 }
  0x3d   : > { %p1463_p6 = pneg %p1462_p5 }
  0x3f   : > { %p1468_p13 = pnand %p1467_p10, %p1463_p6 }
  0xd6   : > { %v518_v12 = vpop.trf.xlu0  ;;  %v372_v13 = vpop.trf.xlu1 }
  0xd7   : > { %1161 = vmatmul.msk.f32.vlgmr.msra.gmra.mxu0 %vm388_vm0, %v372_v13  ;;  %1177 = vmatmul.msk.f32.vlgmr.msra.gmra.mxu1 %vm388_vm0, %v518_v12 }
  0xde   : > { %v519_v14 = vpop.trf.xlu0  ;;  %v373_v15 = vpop.trf.xlu1 }
  0xdf   : > { %1162 = vmatmul.msk.f32.gmra.mxu0 %vm388_vm0, %v373_v15  ;;  %1178 = vmatmul.msk.f32.gmra.mxu1 %vm388_vm0, %v519_v14 }
  0xe6   : > { %v520_v16 = vpop.trf.xlu0  ;;  %v374_v17 = vpop.trf.xlu1 }
  0xe7   : > { %1163 = vmatmul.msk.f32.gmra.mxu0 %vm388_vm0, %v374_v17  ;;  %1179 = vmatmul.msk.f32.gmra.mxu1 %vm388_vm0, %v520_v16 }
  0xee   : > { %v521_v18 = vpop.trf.xlu0  ;;  %v375_v19 = vpop.trf.xlu1 }
  0xef   : > { %1164 = vmatmul.msk.f32.gmra.mxu0 %vm388_vm0, %v375_v19  ;;  %1180 = vmatmul.msk.f32.gmra.mxu1 %vm388_vm0, %v521_v18 }
  0xf6   : > { %v522_v20 = vpop.trf.xlu0  ;;  %v376_v21 = vpop.trf.xlu1 }
  0xf7   : > { %1165 = vmatmul.msk.f32.gmra.mxu0 %vm388_vm0, %v376_v21  ;;  %1181 = vmatmul.msk.f32.gmra.mxu1 %vm388_vm0, %v522_v20 }
  0xfe   : > { %v523_v22 = vpop.trf.xlu0  ;;  %v377_v23 = vpop.trf.xlu1 }
  0xff   : > { %1166 = vmatmul.msk.f32.gmra.mxu0 %vm388_vm0, %v377_v23  ;;  %1182 = vmatmul.msk.f32.gmra.mxu1 %vm388_vm0, %v523_v22 }
 0x106   : > { %v524_v24 = vpop.trf.xlu0  ;;  %v378_v25 = vpop.trf.xlu1 }
 0x107   : > { %1167 = vmatmul.msk.f32.gmra.mxu0 %vm388_vm0, %v378_v25  ;;  %1183 = vmatmul.msk.f32.gmra.mxu1 %vm388_vm0, %v524_v24 }
 0x10e   : > { %v525_v26 = vpop.trf.xlu0  ;;  %v379_v27 = vpop.trf.xlu1 }
 0x10f   : > { %1168 = vmatmul.msk.f32.gmra.mxu0 %vm388_vm0, %v379_v27  ;;  %1184 = vmatmul.msk.f32.gmra.mxu1 %vm388_vm0, %v525_v26 }
 0x116   : > { %v526_v28 = vpop.trf.xlu0  ;;  %v380_v29 = vpop.trf.xlu1 }
 0x117   : > { %1169 = vmatmul.msk.f32.gmra.mxu0 %vm388_vm0, %v380_v29  ;;  %1185 = vmatmul.msk.f32.gmra.mxu1 %vm388_vm0, %v526_v28 }
 0x11e   : > { %v527_v30 = vpop.trf.xlu0  ;;  %v381_v31 = vpop.trf.xlu1 }
 0x11f   : > { %1170 = vmatmul.msk.f32.gmra.mxu0 %vm388_vm0, %v381_v31  ;;  %1186 = vmatmul.msk.f32.vlgmr.msra.gmra.mxu3 %vm388_vm0, %v527_v30 }
 0x126   : > { %v528_v32 = vpop.trf.xlu0  ;;  %v382_v33 = vpop.trf.xlu1 }
 0x127   : > { %1171 = vmatmul.msk.f32.vlgmr.msra.gmra.mxu2 %vm388_vm0, %v382_v33  ;;  %1187 = vmatmul.msk.f32.gmra.mxu3 %vm388_vm0, %v528_v32 }
 0x12e   : > { %v529_v34 = vpop.trf.xlu0  ;;  %v383_v35 = vpop.trf.xlu1 }
 0x12f   : > { %1172 = vmatmul.msk.f32.gmra.mxu2 %vm388_vm0, %v383_v35  ;;  %1188 = vmatmul.msk.f32.gmra.mxu3 %vm388_vm0, %v529_v34 }
 0x136   : > { %v530_v36 = vpop.trf.xlu0  ;;  %v384_v37 = vpop.trf.xlu1 }
 0x137   : > { %1173 = vmatmul.msk.f32.gmra.mxu2 %vm388_vm0, %v384_v37  ;;  %1189 = vmatmul.msk.f32.gmra.mxu3 %vm388_vm0, %v530_v36 }
 0x13e   : > { %v531_v38 = vpop.trf.xlu0  ;;  %v385_v39 = vpop.trf.xlu1 }
 0x13f   : > { %1174 = vmatmul.msk.f32.gmra.mxu2 %vm388_vm0, %v385_v39  ;;  %1190 = vmatmul.msk.f32.gmra.mxu3 %vm388_vm0, %v531_v38 }
 0x146   : > { %v532_v40 = vpop.trf.xlu0  ;;  %v386_v41 = vpop.trf.xlu1 }
 0x147   : > { %1175 = vmatmul.msk.f32.gmra.mxu2 %vm388_vm0, %v386_v41  ;;  %1191 = vmatmul.msk.f32.gmra.mxu3 %vm388_vm0, %v532_v40 }
 0x14e   : > { %v533_v42 = vpop.trf.xlu0  ;;  %v387_v43 = vpop.trf.xlu1 }
 0x14f   : > { %1176 = vmatmul.msk.f32.gmra.mxu2 %vm388_vm0, %v387_v43  ;;  %1192 = vmatmul.msk.f32.gmra.mxu3 %vm388_vm0, %v533_v42 }
 0x154   : > { %v1718_v44 = vpop.f32.mrf.mxu0  ;;  %v1720_v45 = vpop.f32.mrf.mxu1 }
 0x15c   : > { %v1722_v46 = vpop.f32.mrf.mxu0  ;;  %v1724_v47 = vpop.f32.mrf.mxu1 }
 0x164   : > { %v1726_v48 = vpop.f32.mrf.mxu0  ;;  %v1728_v49 = vpop.f32.mrf.mxu1 }
 0x165   : > { %v649_v7 = vmax.f32 %v1718_v44, %v1726_v48  ;;  %v670_v8 = vmax.f32 %v1720_v45, %v1728_v49 }
 0x16c   : > { %v1730_v50 = vpop.f32.mrf.mxu0  ;;  %v1732_v51 = vpop.f32.mrf.mxu1 }
 0x16d   : > { %v650_v9 = vmax.f32 %v1722_v46, %v1730_v50  ;;  %v671_v10 = vmax.f32 %v1724_v47, %v1732_v51 }
 0x174   : > { %v1734_v52 = vpop.f32.mrf.mxu0  ;;  %v1736_v53 = vpop.f32.mrf.mxu1 }
 0x175   : > { %v651_v11 = vmax.f32 %v649_v7, %v1734_v52  ;;  %v672_v12 = vmax.f32 %v670_v8, %v1736_v53 }
 0x17c   : > { %v1738_v54 = vpop.f32.mrf.mxu0  ;;  %v1746_v58 = vpop.f32.mrf.mxu1 }
 0x17d   : > { %v652_v13 = vmax.f32 %v650_v9, %v1738_v54  ;;  %v673_v14 = vmax.f32 %v671_v10, %v1746_v58 }
 0x184   : > { %v1748_v59 = vpop.f32.mrf.mxu0  ;;  %v1754_v63 = vpop.f32.mrf.mxu1 }
 0x185   : > { %v653_v19 = vmax.f32 %v651_v11, %v1748_v59  ;;  %v674_v20 = vmax.f32 %v672_v12, %v1754_v63 }
 0x18c   : > { %v1756_v0 = vpop.f32.mrf.mxu0  ;;  %v1762_v3 = vpop.f32.mrf.mxu1 }
 0x18d   : > { %v654_v21 = vmax.f32 %v652_v13, %v1756_v0  ;;  %v675_v22 = vmax.f32 %v673_v14, %v1762_v3 }
 0x194   : > { %v1764_v4 = vpop.f32.mrf.mxu0  ;;  %v1782_v15 = vpop.f32.mrf.mxu1 }
 0x195   : > { %v655_v23 = vmax.f32 %v653_v19, %v1764_v4  ;;  %v676_v24 = vmax.f32 %v674_v20, %v1782_v15  ;;  %v1802_v19 = vld [vmem:[#allocation2] sm:$0x1]  ;;  %v1804_v20 = vld [vmem:[#allocation2 + $0x1] sm:$0x1] }
 0x19c   : > { %v1784_v16 = vpop.f32.mrf.mxu0 }
 0x19d   : > { %v656_v25 = vmax.f32 %v654_v21, %v1784_v16 }
 0x1a2   : > { %v1740_v55 = vpop.f32.mrf.mxu3 }
 0x1a3   : > { %v677_v26 = vmax.f32 %v675_v22, %v1740_v55 }
 0x1aa   : > { %v1742_v56 = vpop.f32.mrf.mxu2  ;;  %v1744_v57 = vpop.f32.mrf.mxu3 }
 0x1ab   : > { %v657_v27 = vmax.f32 %v655_v23, %v1742_v56  ;;  %v678_v28 = vmax.f32 %v676_v24, %v1744_v57 }
 0x1b2   : > { %v1750_v61 = vpop.f32.mrf.mxu2  ;;  %v1752_v62 = vpop.f32.mrf.mxu3 }
 0x1b3   : > { %v658_v29 = vmax.f32 %v656_v25, %v1750_v61  ;;  %v679_v30 = vmax.f32 %v677_v26, %v1752_v62 }
 0x1ba   : > { %v1758_v1 = vpop.f32.mrf.mxu2  ;;  %v1760_v2 = vpop.f32.mrf.mxu3 }
 0x1bb   : > { %v659_v31 = vmax.f32 %v657_v27, %v1758_v1  ;;  %v680_v32 = vmax.f32 %v678_v28, %v1760_v2 }
 0x1c2   : > { %v1766_v5 = vpop.f32.mrf.mxu2  ;;  %v1768_v6 = vpop.f32.mrf.mxu3 }
 0x1c3   : > { %v660_v33 = vmax.f32 %v658_v29, %v1766_v5  ;;  %v681_v34 = vmax.f32 %v679_v30, %v1768_v6 }
 0x1ca   : > { %v496_v17 = vpop.f32.mrf.mxu2  ;;  %v641_v18 = vpop.f32.mrf.mxu3 }
 0x1cb   : > { %v661_v37 = vmax.f32 %v659_v31, %v496_v17  ;;  %v682_v38 = vmax.f32 %v680_v32, %v641_v18  ;;  %v1535_v32 = vmov 0.0  }
 0x1cc   : > { %338 = vst [vmem:[#allocation3] sm:$0x1] %v1535_v32 }
 0x1cd   : > { %339 = vst [vmem:[#allocation3 + $0x1] sm:$0x1] %v1535_v32 }
 0x1d2   : > { %v499_v35 = vpop.f32.mrf.mxu2  ;;  %v644_v36 = vpop.f32.mrf.mxu3 }
 0x1d3   : > { %v662_v39 = vmax.f32 %v660_v33, %v499_v35  ;;  %v683_v40 = vmax.f32 %v681_v34, %v644_v36 }
 0x1d5   : > { %v663_v41 = vmax.f32 %v661_v37, %v662_v39  ;;  %v684_v42 = vmax.f32 %v682_v38, %v683_v40 }
 0x1d7   : > { %v664_v43 = vrot.slane %v663_v41, 4  ;;  %v685_v60 = vrot.slane %v684_v42, 4 }
 0x1d9   : > { %v665_v7 = vmax.f32 %v663_v41, %v664_v43  ;;  %v686_v8 = vmax.f32 %v684_v42, %v685_v60 }
 0x1db   : > { %v666_v9 = vrot.slane %v665_v7, 2  ;;  %v687_v10 = vrot.slane %v686_v8, 2 }
 0x1dd   : > { %v667_v11 = vmax.f32 %v665_v7, %v666_v9  ;;  %v688_v12 = vmax.f32 %v686_v8, %v687_v10 }
 0x1df   : > { %v668_v13 = vrot.slane %v667_v11, 1  ;;  %v689_v14 = vrot.slane %v688_v12, 1 }
 0x1e1   : > { %v669_v21 = vmax.f32 %v667_v11, %v668_v13  ;;  %v690_v22 = vmax.f32 %v688_v12, %v689_v14 }
 0x1e3   : > { %v1807_v23 = vmax.f32 %v1802_v19, %v669_v21  ;;  %v1810_v24 = vmax.f32 %v1804_v20, %v690_v22 }
 0x1e5   : > { %v1813_v25 = vperm.slane %v1807_v23, 0  ;;  %851 = vst [vmem:[#allocation2] sm:$0x1] %v1807_v23  ;;  %v1817_v26 = vperm.slane %v1810_v24, 0  ;;  %v693_v27 = vsub.f32 %v1802_v19, %v1807_v23 }
 0x1e6   : > { %852 = vst [vmem:[#allocation2 + $0x1] sm:$0x1] %v1810_v24 }
 0x1e7   : > { %v720_v28 = vsub.f32 %v499_v35, %v1813_v25  ;;  %v736_v29 = vsub.f32 %v644_v36, %v1817_v26  ;;  %v719_v30 = vsub.f32 %v496_v17, %v1813_v25  ;;  %v735_v31 = vsub.f32 %v641_v18, %v1817_v26 }
 0x1e8   : > { %v718_v33 = vsub.f32 %v1766_v5, %v1813_v25  ;;  %v734_v34 = vsub.f32 %v1768_v6, %v1817_v26  ;;  %v717_v35 = vsub.f32 %v1758_v1, %v1813_v25  ;;  %v733_v17 = vsub.f32 %v1760_v2, %v1817_v26 }
 0x1e9   : > { %v767_v37 = vmul.f32 1.442695, %v720_v28  ;;  %v799_v38 = vmul.f32 1.442695, %v736_v29  ;;  %v765_v39 = vmul.f32 1.442695, %v719_v30  ;;  %v716_v40 = vsub.f32 %v1750_v61, %v1813_v25 }
 0x1ea   : > { %v797_v36 = vmul.f32 1.442695, %v735_v31  ;;  %v763_v18 = vmul.f32 1.442695, %v718_v33  ;;  %v795_v5 = vmul.f32 1.442695, %v734_v34  ;;  %v732_v6 = vsub.f32 %v1752_v62, %v1817_v26 }
 0x1eb   : > { %1282 = vpow2.f32 %v767_v37  ;;  %v761_v41 = vmul.f32 1.442695, %v717_v35  ;;  %v715_v42 = vsub.f32 %v1742_v56, %v1813_v25  ;;  %v793_v1 = vmul.f32 1.442695, %v733_v17 }
 0x1ec   : > { %1284 = vpow2.f32 %v799_v38  ;;  %v731_v2 = vsub.f32 %v1744_v57, %v1817_v26  ;;  %v759_v43 = vmul.f32 1.442695, %v716_v40  ;;  %v714_v61 = vsub.f32 %v1784_v16, %v1813_v25 }
 0x1ed   : > { %1286 = vpow2.f32 %v765_v39  ;;  %v791_v60 = vmul.f32 1.442695, %v732_v6  ;;  %v730_v62 = vsub.f32 %v1740_v55, %v1817_v26  ;;  %v757_v8 = vmul.f32 1.442695, %v715_v42 }
 0x1ee   : > { %1288 = vpow2.f32 %v797_v36  ;;  %v713_v56 = vsub.f32 %v1764_v4, %v1813_v25  ;;  %v789_v57 = vmul.f32 1.442695, %v731_v2  ;;  %v729_v16 = vsub.f32 %v1782_v15, %v1817_v26 }
 0x1ef   : > { %1290 = vpow2.f32 %v763_v18  ;;  %v755_v55 = vmul.f32 1.442695, %v714_v61  ;;  %v712_v11 = vsub.f32 %v1756_v0, %v1813_v25  ;;  %v787_v4 = vmul.f32 1.442695, %v730_v62 }
 0x1f0   : > { %1292 = vpow2.f32 %v795_v5  ;;  %v728_v13 = vsub.f32 %v1762_v3, %v1817_v26  ;;  %v753_v15 = vmul.f32 1.442695, %v713_v56  ;;  %v711_v21 = vsub.f32 %v1748_v59, %v1813_v25 }
 0x1f1   : > { %v1846_v7 = vpop.eup %1282  ;;  %1294 = vpow2.f32 %v761_v41  ;;  %v785_v0 = vmul.f32 1.442695, %v729_v16  ;;  %v727_v28 = vsub.f32 %v1754_v63, %v1817_v26  ;;  %v751_v3 = vmul.f32 1.442695, %v712_v11 }
 0x1f2   : > { %v1850_v9 = vpop.eup %1284  ;;  %857 = vmatpush.msrb.mxu2 %v1846_v7  ;;  %1296 = vpow2.f32 %v793_v1  ;;  %v710_v30 = vsub.f32 %v1738_v54, %v1813_v25  ;;  %v783_v59 = vmul.f32 1.442695, %v728_v13  ;;  %v726_v32 = vsub.f32 %v1746_v58, %v1817_v26 }
 0x1f3   : > { %v1855_v10 = vpop.eup %1286  ;;  %880 = vmatpush.msrb.mxu3 %v1850_v9  ;;  %1298 = vpow2.f32 %v759_v43  ;;  %v749_v63 = vmul.f32 1.442695, %v711_v21  ;;  %v709_v34 = vsub.f32 %v1734_v52, %v1813_v25  ;;  %v781_v54 = vmul.f32 1.442695, %v727_v28 }
 0x1f4   : > { %v1860_v12 = vpop.eup %1288  ;;  %858 = vmatpush.msrb.mxu2 %v1855_v10  ;;  %1300 = vpow2.f32 %v791_v60  ;;  %v725_v38 = vsub.f32 %v1736_v53, %v1817_v26  ;;  %v694_v58 = vsub.f32 %v1804_v20, %v1810_v24  ;;  %v747_v35 = vmul.f32 1.442695, %v710_v30 }
 0x1f5   : > { %v1865_v14 = vpop.eup %1290  ;;  %881 = vmatpush.msrb.mxu3 %v1860_v12  ;;  %1302 = vpow2.f32 %v757_v8  ;;  %v705_v52 = vsub.f32 %v1718_v44, %v1813_v25  ;;  %v779_v17 = vmul.f32 1.442695, %v726_v32  ;;  %v706_v53 = vsub.f32 %v1722_v46, %v1813_v25 }
 0x1f6   : > { %v1870_v22 = vpop.eup %1292  ;;  %859 = vmatpush.msrb.mxu2 %v1865_v14  ;;  %1304 = vpow2.f32 %v789_v57  ;;  %v745_v40 = vmul.f32 1.442695, %v709_v34  ;;  %v707_v5 = vsub.f32 %v1726_v48, %v1813_v25  ;;  %v777_v44 = vmul.f32 1.442695, %v725_v38 }
 0x1f7   : > { %v1875_v29 = vpop.eup %1294  ;;  %882 = vmatpush.msrb.mxu3 %v1870_v22  ;;  %1306 = vpow2.f32 %v755_v55  ;;  %v708_v41 = vsub.f32 %v1730_v50, %v1813_v25  ;;  %v737_v46 = vmul.f32 1.442695, %v705_v52  ;;  %v721_v1 = vsub.f32 %v1720_v45, %v1817_v26 }
 0x1f8   : > { %v1880_v31 = vpop.eup %1296  ;;  %860 = vmatpush.msrb.mxu2 %v1875_v29  ;;  %1308 = vpow2.f32 %v787_v4  ;;  %v739_v48 = vmul.f32 1.442695, %v706_v53  ;;  %v722_v43 = vsub.f32 %v1724_v47, %v1817_v26  ;;  %v741_v50 = vmul.f32 1.442695, %v707_v5  ;;  %v855_v5 = vld [vmem:[%s294_s18 + $0x10] sm:$0xff] }
 0x1f9   : > { %v1885_v33 = vpop.eup %1298  ;;  %883 = vmatpush.msrb.mxu3 %v1880_v31  ;;  %1310 = vpow2.f32 %v753_v15  ;;  %v723_v25 = vsub.f32 %v1728_v49, %v1817_v26  ;;  %v743_v45 = vmul.f32 1.442695, %v708_v41  ;;  %v724_v62 = vsub.f32 %v1732_v51, %v1817_v26 }
 0x1fa   : > { %v1890_v37 = vpop.eup %1300  ;;  %861 = vmatpush.msrb.mxu2 %v1885_v33  ;;  %1312 = vpow2.f32 %v785_v0  ;;  %v769_v47 = vmul.f32 1.442695, %v721_v1  ;;  %v771_v57 = vmul.f32 1.442695, %v722_v43 }
 0x1fb   : > { %v1897_v39 = vpop.eup %1302  ;;  %884 = vmatpush.msrb.mxu3 %v1890_v37  ;;  %1314 = vpow2.f32 %v751_v3  ;;  %v773_v49 = vmul.f32 1.442695, %v723_v25  ;;  %v775_v11 = vmul.f32 1.442695, %v724_v62  ;;  %v856_v62 = vld [vmem:[%s294_s18 + $0x18] sm:$0xff] }
 0x1fc   : > { %v1902_v36 = vpop.eup %1304  ;;  %862 = vmatpush.msrb.mxu2 %v1897_v39  ;;  %1316 = vpow2.f32 %v783_v59 }
 0x1fd   : > { %v1907_v18 = vpop.eup %1306  ;;  %885 = vmatpush.msrb.mxu3 %v1902_v36  ;;  %1318 = vpow2.f32 %v749_v63 }
 0x1fe   : > { %v1912_v6 = vpop.eup %1308  ;;  %863 = vmatpush.msrb.mxu2 %v1907_v18  ;;  %1320 = vpow2.f32 %v781_v54 }
 0x1ff   : > { %v1917_v42 = vpop.eup %1310  ;;  %886 = vmatpush.msrb.mxu3 %v1912_v6  ;;  %1322 = vpow2.f32 %v747_v35  ;;  %v853_v35 = vld [vmem:[%s294_s18] sm:$0xff] }
 0x200   : > { %v1922_v2 = vpop.eup %1312  ;;  %864 = vmatpush.msrb.mxu2 %v1917_v42  ;;  %1324 = vpow2.f32 %v779_v17 }
 0x201   : > { %v1927_v61 = vpop.eup %1314  ;;  %887 = vmatpush.msrb.mxu3 %v1922_v2  ;;  %1326 = vpow2.f32 %v745_v40 }
 0x202   : > { %v1932_v60 = vpop.eup %1316  ;;  %865 = vmatpush.msrb.mxu2 %v1927_v61  ;;  %1328 = vpow2.f32 %v777_v44 }
 0x203   : > { %v1319_v8 = vpop.eup %1318  ;;  %888 = vmatpush.msrb.mxu3 %v1932_v60  ;;  %1330 = vpow2.f32 %v737_v46 }
 0x204   : > { %v1321_v56 = vpop.eup %1320  ;;  %866 = vmatpush.msrb.mxu2 %v1319_v8  ;;  %1332 = vpow2.f32 %v739_v48  ;;  %v854_v48 = vld [vmem:[%s294_s18 + $0x8] sm:$0xff] }
 0x205   : > { %v1323_v16 = vpop.eup %1322  ;;  %889 = vmatpush.msrb.mxu3 %v1321_v56  ;;  %1334 = vpow2.f32 %v741_v50 }
 0x206   : > { %v1325_v55 = vpop.eup %1324  ;;  %867 = vmatpush.msrb.mxu2 %v1323_v16  ;;  %1336 = vpow2.f32 %v743_v45 }
 0x207   : > { %v1327_v4 = vpop.eup %1326  ;;  %890 = vmatpush.msrb.mxu3 %v1325_v55  ;;  %1338 = vpow2.f32 %v769_v47 }
 0x208   : > { %v1329_v51 = vpop.eup %1328  ;;  %868 = vmatpush.msrb.mxu2 %v1327_v4  ;;  %1340 = vpow2.f32 %v771_v57 }
 0x209   : > { %v1331_v26 = vpop.eup %1330  ;;  %891 = vmatpush.msrb.mxu3 %v1329_v51  ;;  %1342 = vpow2.f32 %v773_v49 }
 0x20a   : > { %v1333_v13 = vpop.eup %1332  ;;  %1344 = vpow2.f32 %v775_v11 }
 0x20b   : > { %v1335_v15 = vpop.eup %1334  ;;  %v805_v21 = vadd.f32 %v1333_v13, %v1331_v26 }
 0x20c   : > { %v1337_v0 = vpop.eup %1336 }
 0x20d   : > { %v1339_v28 = vpop.eup %1338  ;;  %v806_v3 = vadd.f32 %v1335_v15, %v805_v21  ;;  %869 = vmatpush.msrb.mxu2 %v1337_v0 }
 0x20e   : > { %v1341_v30 = vpop.eup %1340 }
 0x20f   : > { %v1343_v59 = vpop.eup %1342  ;;  %v807_v32 = vadd.f32 %v1337_v0, %v806_v3  ;;  %v826_v63 = vadd.f32 %v1341_v30, %v1339_v28  ;;  %870 = vmatpush.msrb.mxu2 %v1335_v15 }
 0x210   : > { %v1345_v34 = vpop.eup %1344 }
 0x211   : > { %v808_v54 = vadd.f32 %v1327_v4, %v807_v32  ;;  %v827_v38 = vadd.f32 %v1343_v59, %v826_v63  ;;  %892 = vmatpush.msrb.mxu3 %v1345_v34  ;;  %871 = vmatpush.msrb.mxu2 %v1333_v13  ;;  %v802_v4 = vld [vmem:[#allocation3 + $0x1] sm:$0x1] }
 0x213   : > { %v809_v52 = vadd.f32 %v1323_v16, %v808_v54  ;;  %v828_v17 = vadd.f32 %v1345_v34, %v827_v38  ;;  %893 = vmatpush.msrb.mxu3 %v1343_v59  ;;  %872 = vmatpush.msrb.mxu2 %v1331_v26 }
 0x214   : > { %873 = vmatmul.f32.vlgmr.msrb.gmra.mxu2 %v853_v35 }
 0x215   : > { %v810_v53 = vadd.f32 %v1319_v8, %v809_v52  ;;  %v829_v40 = vadd.f32 %v1329_v51, %v828_v17  ;;  %894 = vmatpush.msrb.mxu3 %v1341_v30 }
 0x217   : > { %v811_v44 = vadd.f32 %v1927_v61, %v810_v53  ;;  %v830_v41 = vadd.f32 %v1325_v55, %v829_v40  ;;  %895 = vmatpush.msrb.mxu3 %v1339_v28 }
 0x218   : > { %896 = vmatmul.f32.vlgmr.msrb.gmra.mxu3 %v855_v5 }
 0x219   : > { %v812_v46 = vadd.f32 %v1917_v42, %v811_v44  ;;  %v831_v1 = vadd.f32 %v1321_v56, %v830_v41 }
 0x21b   : > { %v813_v43 = vadd.f32 %v1907_v18, %v812_v46  ;;  %v832_v50 = vadd.f32 %v1932_v60, %v831_v1 }
 0x21c   : > { %876 = vmatmul.f32.gmra.mxu2 %v854_v48 }
 0x21d   : > { %v814_v25 = vadd.f32 %v1897_v39, %v813_v43  ;;  %v833_v45 = vadd.f32 %v1922_v2, %v832_v50  ;;  %v695_v2 = vmul.f32 1.442695, %v693_v27 }
 0x21f   : > { %v815_v8 = vadd.f32 %v1885_v33, %v814_v25  ;;  %v834_v61 = vadd.f32 %v1912_v6, %v833_v45  ;;  %1346 = vpow2.f32 %v695_v2 }
 0x220   : > { %899 = vmatmul.f32.gmra.mxu3 %v856_v62 }
 0x221   : > { %v816_v47 = vadd.f32 %v1875_v29, %v815_v8  ;;  %v835_v42 = vadd.f32 %v1902_v36, %v834_v61 }
 0x223   : > { %v817_v56 = vadd.f32 %v1865_v14, %v816_v47  ;;  %v836_v18 = vadd.f32 %v1890_v37, %v835_v42  ;;  %v697_v14 = vmul.f32 1.442695, %v694_v58 }
 0x225   : > { %v818_v60 = vadd.f32 %v1855_v10, %v817_v56  ;;  %v837_v39 = vadd.f32 %v1880_v31, %v836_v18  ;;  %1348 = vpow2.f32 %v697_v14  ;;  %v1347_v27 = vpop.eup %1346 }
 0x226   : > { %v909_v38 = vperm.slane %v1347_v27, 0 }
 0x227   : > { %v819_v33 = vadd.f32 %v1846_v7, %v818_v60  ;;  %v838_v6 = vadd.f32 %v1870_v22, %v837_v39  ;;  %v801_v7 = vld [vmem:[#allocation3] sm:$0x1] }
 0x228   : > { %v913_v44 = vmul.f32 0.0, %v909_v38 }
 0x229   : > { %v820_v57 = vrot.slane %v819_v33, 4  ;;  %v839_v29 = vadd.f32 %v1860_v12, %v838_v6  ;;  %v803_v12 = vmul.f32 %v1347_v27, %v801_v7 }
 0x22b   : > { %v821_v37 = vadd.f32 %v820_v57, %v819_v33  ;;  %v840_v10 = vadd.f32 %v1850_v9, %v839_v29  ;;  %v1349_v11 = vpop.eup %1348 }
 0x22c   : > { %v804_v58 = vmul.f32 %v1349_v11, %v802_v4  ;;  %v910_v41 = vperm.slane %v1349_v11, 0 }
 0x22d   : > { %v822_v31 = vrot.slane %v821_v37, 2  ;;  %v841_v36 = vrot.slane %v840_v10, 4 }
 0x22e   : > { %v915_v62 = vmul.f32 0.0, %v910_v41 }
 0x22f   : > { %v823_v19 = vadd.f32 %v822_v31, %v821_v37  ;;  %v842_v23 = vadd.f32 %v841_v36, %v840_v10 }
 0x231   : > { %v824_v16 = vrot.slane %v823_v19, 1  ;;  %v843_v22 = vrot.slane %v842_v23, 2 }
 0x233   : > { %v825_v49 = vadd.f32 %v824_v16, %v823_v19  ;;  %v844_v55 = vadd.f32 %v843_v22, %v842_v23 }
 0x235   : > { %v845_v51 = vrot.slane %v844_v55, 1  ;;  %v847_v20 = vadd.f32 %v825_v49, %v803_v12 }
 0x237   : > { %v846_v24 = vadd.f32 %v845_v51, %v844_v55  ;;  %849 = vst [vmem:[#allocation3] sm:$0x1] %v847_v20 }
 0x239   : > { %v848_v9 = vadd.f32 %v846_v24, %v804_v58 }
 0x23b   : > { %850 = vst [vmem:[#allocation3 + $0x1] sm:$0x1] %v848_v9 }
 0x23e   : > { %v932_v26 = vld [vmem:[#allocation3] sm:$0x1] }
 0x23f   : > { %1350 = vrcp.f32 %v932_v26  ;;  %v945_v34 = vand.u32 2147483648, %v932_v26  ;;  %vm939_vm2 = vweird.f32 %v932_v26  ;;  %v943_v54 = vand.u32 2147483647, %v932_v26 }
 0x241   : > { %v946_v17 = vor.u32 1.1754944e-38, %v945_v34  ;;  %vm944_vm5 = vcmp.eq.f32.partialorder %v943_v54, 8.507059e+37 }
 0x242   : > { %v933_v13 = vld [vmem:[#allocation3 + $0x1] sm:$0x1] }
 0x243   : > { %1352 = vrcp.f32 %v933_v13  ;;  %v960_v53 = vand.u32 2147483648, %v933_v13  ;;  %vm954_vm6 = vweird.f32 %v933_v13  ;;  %v958_v40 = vand.u32 2147483647, %v933_v13 }
 0x245   : > { %v1351_v15 = vpop.eup %1350  ;;  %v961_v48 = vor.u32 1.1754944e-38, %v960_v53  ;;  %vm959_vm8 = vcmp.eq.f32.partialorder %v958_v40, 8.507059e+37 }
 0x246   : > { %v935_v21 = vmul.f32 %v1351_v15, %v932_v26  ;;  %vm940_vm1 = vweird.f32 %v1351_v15 }
 0x247   : > { %vm941_vm3 = vmor %vm939_vm2, %vm940_vm1 }
 0x248   : > { %v936_v28 = vsub.f32 1.0, %v935_v21 }
 0x249   : > { %v1353_v0 = vpop.eup %1352 }
 0x24a   : > { %v950_v3 = vmul.f32 %v1353_v0, %v933_v13  ;;  %v937_v30 = vmul.f32 %v1351_v15, %v936_v28  ;;  %vm955_vm4 = vweird.f32 %v1353_v0 }
 0x24b   : > { %vm956_vm7 = vmor %vm954_vm6, %vm955_vm4 }
 0x24c   : > { %v951_v59 = vsub.f32 1.0, %v950_v3  ;;  %v938_v32 = vadd.f32 %v1351_v15, %v937_v30 }
 0x24e   : > { %v952_v63 = vmul.f32 %v1353_v0, %v951_v59  ;;  %v942_v35 = vsel %vm941_vm3, %v1351_v15, %v938_v32 }
 0x24f   : > { %v947_v5 = vsel %vm944_vm5, %v946_v17, %v942_v35 }
 0x250   : > { %v953_v52 = vadd.f32 %v1353_v0, %v952_v63  ;;  %v966_v50 = vperm.slane %v947_v5, 0 }
 0x252   : > { %v957_v46 = vsel %vm956_vm7, %v1353_v0, %v953_v52 }
 0x253   : > { %v962_v25 = vsel %vm959_vm8, %v961_v48, %v957_v46 }
 0x254   : > { %v967_v47 = vperm.slane %v962_v25, 0 }
 0x297   : > { %v874_v1 = vpop.f32.mrf.mxu2 }
 0x298   : > { %v917_v43 = vadd.f32 %v913_v44, %v874_v1 }
 0x29a   : > { %v970_v45 = vmul.f32 %v966_v50, %v917_v43 }
 0x29b   : > { %v897_v8 = vpop.f32.mrf.mxu3 }
 0x29c   : > { %974 = vst [vmem:[%s327_s24] sm:$0xff] %v970_v45  ;;  %v919_v61 = vadd.f32 %v915_v62, %v897_v8 }
 0x29e   : > { %v972_v42 = vmul.f32 %v967_v47, %v919_v61 }
 0x29f   : > { %v877_v56 = vpop.f32.mrf.mxu2 }
 0x2a0   : > { %976 = vst [vmem:[%s327_s24 + $0x10] sm:$0xff] %v972_v42  ;;  %v918_v18 = vadd.f32 %v913_v44, %v877_v56 }
 0x2a2   : > { %v971_v60 = vmul.f32 %v966_v50, %v918_v18 }
 0x2a3   : > { %v900_v39 = vpop.f32.mrf.mxu3 }
 0x2a4   : > { %975 = vst [vmem:[%s327_s24 + $0x8] sm:$0xff] %v971_v60  ;;  %v920_v2 = vadd.f32 %v915_v62, %v900_v39 }
 0x2a6   : > { %v973_v33 = vmul.f32 %v967_v47, %v920_v2 }
 0x2a8   : > { %977 = vst [vmem:[%s327_s24 + $0x18] sm:$0xff] %v973_v33 }
 0x2a9   : > { %1471 = shalt.err (!%p1468_p13)
}
 0x2aa   : > { %s1536_s11 = smov 128   ;;  %s1537_s19 = smov 8  }
 0x2ab   : > { %1210 = dma.vmem_to_hbm [thread:$0]  (%p1613_p9), %s996_s21, 512, %s998_s22, %s979_s15, %s1536_s11, %s1536_s11, %s1537_s19  }
 0x2ac PF: > { %s2027_s1 = sld [smem:[#allocation17_spill]]  ;;  %s1012_s16 = sand.u32 1, %s1510_s12  }
 0x2ad   : > { %p1223_p0 = pnand %p1149_p12, %p1620_p11  ;;  %s1013_s20 = scalar_lea.sflag [#allocation7], %s1012_s16 }
 0x2af   : > { %p1224_p1 = pneg %p1223_p0 }
 0x2b1   : > { %1505 = dma.done.wait (%p1224_p1), %s1013_s20, 512  }
 0x2b2   : > { %1507 = vsyncadd (%p1224_p1), %s1013_s20, 4294966784  ;;  %s22_s17 = sadd.s32 1, %s2027_s1   ;;  %s2028_s14 = sld [smem:[#allocation15_spill]] }
 0x2b3   : > { %p19_p2 = scmp.ge.s32.totalorder %s22_s17, 4   ;;  %s2029_s26 = sld [smem:[#allocation19_spill]] }
 0x2b4   : > { %s2030_s15 = sld [smem:[#allocation16_spill]]  ;;  %s2032_s12 = smov %s1514_s13 }
 0x2b5   : > { %s2031_s16 = sld [smem:[#allocation18_spill]]  ;;  %21 = sbr.rel (!%p19_p2) target bundleno = 10 (0xa), region = 109 }
 0x2b8   : > { %s2033_s13 = smov %s2028_s14 }
 0x2b9   : > { %s2034_s14 = smov %s2029_s26 }
 0x2ba   :  { %1019 = vsyncpa [#allocation6], 1 }
 0x2bb   :  { %1021 = vsyncpa [#allocation6 + $0x1], 1 }
 0x2bc   :  { %1022 = vsyncpa [#allocation9], 1 }
 0x2bd   :  { %1024 = vsyncpa [#allocation9 + $0x1], 1 }
 0x2be   :  { %1025 = vsyncpa [#allocation7], 1 }
 0x2bf   :  { %1027 = vsyncpa [#allocation7 + $0x1], 1 }

</bundles_post_ra>
